<compile_context>
chip_gen: v7x
topology: tpu7x:2x2x1
jax: 0.10.0
libtpu: 0.0.40
codegen_flags: <defaults>
</compile_context>

<pallas_src>
import math

import jax
import jax.numpy as jnp
from jax.experimental import pallas as pl
from jax.experimental.pallas import tpu as pltpu


def _is_pow2(n: int) -> bool:
    return n > 0 and (n & (n - 1)) == 0


def _make_kernel(F: int, use_pow2_feat: bool):
    """Kernel over a (TB, S*F) flattened tile + a (TB, 1) int32 index column."""

    if use_pow2_feat:

        def kernel(idx_ref, x_ref, o_ref):
            x = x_ref[...]                                       # (TB, SFp)
            lo = idx_ref[...] * F                                # (TB, 1)
            pos = jax.lax.broadcasted_iota(jnp.int32, x.shape, 1)

            in_masked_row = (pos >= lo) & (pos < lo + F)
            masked = jnp.where(in_masked_row, jnp.asarray(0, x.dtype), x)

            feat4 = (pos & (F - 1)) == 4                         # idx-independent
            s4 = jnp.sum(
                jnp.where(feat4, masked, jnp.asarray(0, x.dtype)).astype(jnp.float32),
                axis=1, keepdims=True)                           # (TB, 1)
            cond = s4 >= 2.0

            repl_sel = cond & (pos == lo + 3)
            o_ref[...] = jnp.where(repl_sel, jnp.asarray(999, x.dtype), masked)

        return kernel

    def kernel(idx_ref, feat4_ref, x_ref, o_ref):
        x = x_ref[...]                                           # (TB, SFp)
        lo = idx_ref[...] * F                                    # (TB, 1)
        pos = jax.lax.broadcasted_iota(jnp.int32, x.shape, 1)

        in_masked_row = (pos >= lo) & (pos < lo + F)
        masked = jnp.where(in_masked_row, jnp.asarray(0, x.dtype), x)

        feat4 = feat4_ref[...] != 0                              # (1, SFp) bcast
        s4 = jnp.sum(
            jnp.where(feat4, masked, jnp.asarray(0, x.dtype)).astype(jnp.float32),
            axis=1, keepdims=True)
        cond = s4 >= 2.0

        repl_sel = cond & (pos == lo + 3)
        o_ref[...] = jnp.where(repl_sel, jnp.asarray(999, x.dtype), masked)

    return kernel


def _tpu_generation() -> int:
    try:
        kind = jax.devices()[0].device_kind.lower()
    except Exception:
        kind = ""
    if "v7" in kind:
        return 7
    if "v6" in kind:
        return 6
    if "v5" in kind:
        return 5
    return 6


def _choose_tiling(B: int, row_bytes: int, itemsize: int, gen: int):
    """Batch rows per grid step + VMEM limit, per TPU generation."""
    if gen == 5:
        target_bytes, vmem_limit = 4 << 20, 20 << 20
    elif gen == 7:
        target_bytes, vmem_limit = 5 << 20, 28 << 20
    else:  # v6e
        target_bytes, vmem_limit = 7 << 20, 36 << 20

    # dtype-aware sublane alignment (bf16 packs 16 rows/vreg, int8/fp8 pack 32)
    sub = 8 if itemsize >= 4 else (16 if itemsize == 2 else 32)

    tb = max(1, target_bytes // max(row_bytes, 1))
    if gen == 7:
        tb = min(tb, pl.cdiv(B, 2))          # keep >= 2 grid steps for 2 TCs
    if tb < B:
        tb = max(sub, (tb // sub) * sub)     # sublane-aligned partial block
    tb = min(tb, B)

    if gen == 7 and tb < B:
        # Prefer an even grid-step count so both TensorCores stay busy.
        g = pl.cdiv(B, tb)
        if g % 2 == 1:
            cand = pl.cdiv(B, g + 1)
            cand = max(sub, ((cand + sub - 1) // sub) * sub)
            if cand <= B and pl.cdiv(B, cand) % 2 == 0:
                tb = cand
    return tb, vmem_limit


def particle_mask(x, random_idxs, *, group_size: int):
    """Pallas implementation of ParticleMask.forward.

    `random_idxs` (shape (B,), int) plays the role of the torch.randint draw
    inside the torch forward; pass precomputed indices for determinism.
    """
    assert x.ndim == 3, "Input tensor must be 3-dimensional (batch, seq_len, dim_in)"
    B, S, F = x.shape
    assert F == group_size, "features must equal group_size"
    assert F >= 5, "forward indexes feature 4; need features >= 5"
    assert random_idxs.shape == (B,)

    # Lane-dense flattened layout: pad S so (S_pad * F) % 128 == 0.
    lane = 128
    s_mult = lane // math.gcd(F, lane)
    S_pad = ((S + s_mult - 1) // s_mult) * s_mult
    x_in = x if S_pad == S else jnp.pad(x, ((0, 0), (0, S_pad - S), (0, 0)))

    SFp = S_pad * F
    x_flat = x_in.reshape(B, SFp)                    # free, lane-dense view
    idx_col = random_idxs.astype(jnp.int32).reshape(B, 1)

    itemsize = jnp.dtype(x.dtype).itemsize
    row_bytes = SFp * itemsize
    gen = _tpu_generation()
    TB, vmem_limit = _choose_tiling(B, row_bytes, itemsize, gen)
    grid = (pl.cdiv(B, TB),)

    use_pow2 = _is_pow2(F)
    kernel = _make_kernel(F, use_pow2)

    in_specs = [pl.BlockSpec((TB, 1), lambda b: (b, 0))]         # random row idx
    args = [idx_col]
    if not use_pow2:
        feat4_row = (jnp.arange(SFp, dtype=jnp.int32) % F == 4).astype(
            jnp.int32).reshape(1, SFp)
        in_specs.append(pl.BlockSpec((1, SFp), lambda b: (0, 0)))
        args.append(feat4_row)
    in_specs.append(pl.BlockSpec((TB, SFp), lambda b: (b, 0)))   # flattened x
    args.append(x_flat)

    out_flat = pl.pallas_call(
        kernel,
        out_shape=jax.ShapeDtypeStruct((B, SFp), x.dtype),
        grid_spec=pltpu.PrefetchScalarGridSpec(
            num_scalar_prefetch=0,
            grid=grid,
            in_specs=in_specs,
            out_specs=pl.BlockSpec((TB, SFp), lambda b: (b, 0)),
        ),
        compiler_params=pltpu.CompilerParams(
            dimension_semantics=("parallel",),
            vmem_limit_bytes=vmem_limit,
        ),
    )(*args)

    out = out_flat.reshape(B, S_pad, F)
    if S_pad != S:
        out = out[:, :S, :]
    return out


def particle_mask_random(x, key, *, group_size: int):
    """Convenience mirroring the torch module (draws the indices internally)."""
    B, S, _ = x.shape
    idxs = jax.random.randint(key, (B,), 0, S, dtype=jnp.int32)
    return particle_mask(x, idxs, group_size=group_size), idxs


def _reference(x, random_idxs):
    # Pure-JAX reference mirroring the PyTorch forward, for verification.
    B, S, F = x.shape
    row = jnp.arange(S)[None, :, None]
    feat = jnp.arange(F)[None, None, :]
    idx = random_idxs.reshape(B, 1, 1)
    masked = jnp.where(row == idx, jnp.asarray(0, x.dtype), x)
    sums = masked[:, :, 4].astype(jnp.float32).sum(axis=1)       # (B,)
    cond = (sums >= 2.0)[:, None, None]
    repl = cond & (row == idx) & (feat == 3)
    return jnp.where(repl, jnp.asarray(999, x.dtype), masked)


if __name__ == "__main__":
    key = jax.random.PRNGKey(0)
    kx, ki = jax.random.split(key)

    B, S, F = 16, 8, 8                      # features == group_size >= 5
    x = jax.random.normal(kx, (B, S, F), dtype=jnp.float32) * 2.0
    random_idxs = jax.random.randint(ki, (B,), 0, S, dtype=jnp.int32)

    out = particle_mask(x, random_idxs, group_size=F)
    out = jax.block_until_ready(out)

    ref = _reference(x, random_idxs)
    assert out.shape == (B, S, F)
    assert jnp.allclose(out, ref, atol=1e-6), "mismatch vs reference"
    print("KERNEL_OK")
</pallas_src>

<mosaic_0001>
module attributes {stable_mosaic.version = 11 : i64} {
  func.func @kernel(%arg0: i32, %arg1: memref<16x1xi32, #tpu.memory_space<vmem>>, %arg2: memref<16x128xf32, #tpu.memory_space<vmem>>, %arg3: memref<16x128xf32, #tpu.memory_space<vmem>>) attributes {dimension_semantics = [#tpu.dimension_semantics<parallel>], iteration_bounds = array<i64: 1>, scalar_prefetch = 0 : i64, scratch_operands = 0 : i64, tpu.core_type = #tpu.core_type<tc>, window_params = [{transform_indices = @transform_0, window_bounds = array<i64: 16, 1>}, {transform_indices = @transform_1, window_bounds = array<i64: 16, 128>}, {transform_indices = @transform_2, window_bounds = array<i64: 16, 128>}]} {
    %c0 = arith.constant 0 : index
    %c0_0 = arith.constant 0 : index
    %0 = vector.load %arg2[%c0, %c0_0] : memref<16x128xf32, #tpu.memory_space<vmem>>, vector<16x128xf32>
    %c0_1 = arith.constant 0 : index
    %c0_2 = arith.constant 0 : index
    %1 = vector.load %arg1[%c0_1, %c0_2] : memref<16x1xi32, #tpu.memory_space<vmem>>, vector<16x1xi32>
    %c8_i32 = arith.constant 8 : i32
    %2 = vector.broadcast %c8_i32 : i32 to vector<16x1xi32>
    %3 = arith.muli %1, %2 : vector<16x1xi32>
    %4 = tpu.iota {dimensions = array<i32: 1>} : vector<16x128xi32>
    %5 = vector.broadcast %3 : vector<16x1xi32> to vector<16x128xi32>
    %6 = arith.cmpi sge, %4, %5 : vector<16x128xi32>
    %c8_i32_3 = arith.constant 8 : i32
    %7 = vector.broadcast %c8_i32_3 : i32 to vector<16x1xi32>
    %8 = arith.addi %3, %7 : vector<16x1xi32>
    %9 = vector.broadcast %8 : vector<16x1xi32> to vector<16x128xi32>
    %10 = arith.cmpi slt, %4, %9 : vector<16x128xi32>
    %11 = arith.andi %6, %10 : vector<16x128xi1>
    %cst = arith.constant 0.000000e+00 : f32
    %12 = vector.broadcast %cst : f32 to vector<16x128xf32>
    %13 = arith.select %11, %12, %0 : vector<16x128xi1>, vector<16x128xf32>
    %c7_i32 = arith.constant 7 : i32
    %14 = vector.broadcast %c7_i32 : i32 to vector<16x128xi32>
    %15 = arith.andi %4, %14 : vector<16x128xi32>
    %c4_i32 = arith.constant 4 : i32
    %16 = vector.broadcast %c4_i32 : i32 to vector<16x128xi32>
    %17 = arith.cmpi eq, %15, %16 : vector<16x128xi32>
    %cst_4 = arith.constant 0.000000e+00 : f32
    %18 = vector.broadcast %cst_4 : f32 to vector<16x128xf32>
    %19 = arith.select %17, %13, %18 : vector<16x128xi1>, vector<16x128xf32>
    %cst_5 = arith.constant dense<0.000000e+00> : vector<16xf32>
    %20 = vector.multi_reduction <add>, %19, %cst_5 [1] : vector<16x128xf32> to vector<16xf32>
    %21 = vector.shape_cast %20 : vector<16xf32> to vector<16x1xf32>
    %cst_6 = arith.constant 2.000000e+00 : f32
    %22 = vector.broadcast %cst_6 : f32 to vector<16x1xf32>
    %23 = arith.cmpf oge, %21, %22 : vector<16x1xf32>
    %c3_i32 = arith.constant 3 : i32
    %24 = vector.broadcast %c3_i32 : i32 to vector<16x1xi32>
    %25 = arith.addi %3, %24 : vector<16x1xi32>
    %26 = vector.broadcast %25 : vector<16x1xi32> to vector<16x128xi32>
    %27 = arith.cmpi eq, %4, %26 : vector<16x128xi32>
    %28 = vector.broadcast %23 : vector<16x1xi1> to vector<16x128xi1>
    %29 = arith.andi %28, %27 : vector<16x128xi1>
    %cst_7 = arith.constant 9.990000e+02 : f32
    %30 = vector.broadcast %cst_7 : f32 to vector<16x128xf32>
    %31 = arith.select %29, %30, %13 : vector<16x128xi1>, vector<16x128xf32>
    %c0_8 = arith.constant 0 : index
    %c0_9 = arith.constant 0 : index
    %32 = vector.load %arg3[%c0_8, %c0_9] : memref<16x128xf32, #tpu.memory_space<vmem>>, vector<16x128xf32>
    tpu.vector_store %arg3[%c0_8, %c0_9], %31 {strides = array<i32>} : memref<16x128xf32, #tpu.memory_space<vmem>>, vector<16x128xf32>,
    return
  }
  func.func @transform_0(%arg0: i32) -> (i32, i32) {
    %c0_i32 = arith.constant 0 : i32
    %c0_i32_0 = arith.constant 0 : i32
    return %arg0, %c0_i32 : i32, i32
  }
  func.func @transform_1(%arg0: i32) -> (i32, i32) {
    %c0_i32 = arith.constant 0 : i32
    %c0_i32_0 = arith.constant 0 : i32
    return %arg0, %c0_i32 : i32, i32
  }
  func.func @transform_2(%arg0: i32) -> (i32, i32) {
    %c0_i32 = arith.constant 0 : i32
    %c0_i32_0 = arith.constant 0 : i32
    return %arg0, %c0_i32 : i32, i32
  }
}

</mosaic_0001>

<bundles_post_ra>
// kernel: tpu_custom_call.1
= control target key start
LH: loop header
LB: loop body
LE: loop exit
PB: predicated region body
PF: predicated region fallthrough
CT: control target
= control target key end

     0   :  { %s161_s0 = inlined_call_operand.vmem [shape: s32[16,1], index: 0, kind: input, shape index: {}]   ;;  %s162_s1 = inlined_call_operand.vmem [shape: f32[16,128], index: 1, kind: input, shape index: {}]   ;;  %s163_s2 = inlined_call_operand.hbm [shape: f32[16,128], index: 2, kind: output, shape index: {}]  }
   0x1   :  { %v14_v0 = vld [vmem:[%s161_s0] sm:$0xff]  ;;  %v15_v1 = vld [vmem:[%s161_s0 + $0x8] sm:$0xff] }
   0x2   :  { %7 = vsyncpa [#allocation3], 0  ;;  %v118_v2 = vmov 0   ;;  %v16_v3 = vmul.u32 8, %v14_v0  ;;  %v17_v4 = vmul.u32 8, %v15_v1  ;;  %v18_v7 = vlaneseq  ;;  %v12_v12 = vld [vmem:[%s162_s1] sm:$0xff] }
   0x3   :  { %92 = vset.pattern.permute.xlu0 %v118_v2  ;;  %93 = vset.pattern.permute.xlu1 %v118_v2  ;;  %v13_v17 = vld [vmem:[%s162_s1 + $0x8] sm:$0xff]  ;;  %s119_s16 = smov [#allocation2]  }
   0x4   :  { %21 = vperm.xlu0 %92, %v16_v3   ;;  %v28_v5 = vadd.s32 8, %v16_v3  ;;  %v29_v6 = vadd.s32 8, %v17_v4  ;;  %v19_v8 = vand.u32 127, %v18_v7  ;;  %v53_v20 = vadd.s32 3, %v17_v4  ;;  %s77_s17 = sshll.u32 %s119_s16, 4  ;;  %s78_s17 = int_to_ptr.vmem [resolvable:$true] %s77_s17 }
   0x5   :  { %v52_v21 = vadd.s32 3, %v16_v3  ;;  %s94_s1 = scalar_lea.vmem %s78_s17, 256  ;;  %p99_p1 = scmp.lt.s32.totalorder %s78_s17, %s78_s17 }
   0x6   :  { %31 = vperm.xlu1 %93, %v28_v5   ;;  %v42_v9 = vand.u32 7, %v19_v8  ;;  %p95_p0 = scmp.ne.s32.totalorder %s78_s17, %s94_s1  ;;  %p100_p2 = scmp.lt.s32.totalorder %s94_s1, %s94_s1 }
   0x8   :  { %24 = vperm.xlu0 %92, %v17_v4   ;;  %vm43_vm2 = vcmp.eq.s32.totalorder %v42_v9, 4  ;;  %p101_p3 = por %p100_p2, %p99_p1 }
   0xa   :  { %34 = vperm.xlu1 %93, %v29_v6   ;;  %p102_p4 = pnand %p101_p3, %p95_p0 }
  0x83   :  { %v22_v10 = vpop.permute.xlu0 %21 }
  0x84   :  { %vm26_vm0 = vcmp.ge.s32.totalorder %v19_v8, %v22_v10 }
  0x85   :  { %v32_v11 = vpop.permute.xlu1 %31 }
  0x86   :  { %vm36_vm1 = vcmp.lt.s32.totalorder %v19_v8, %v32_v11 }
  0x87   :  { %vm38_vm3 = vmand %vm26_vm0, %vm36_vm1  ;;  %v25_v13 = vpop.permute.xlu0 %24 }
  0x88   :  { %v40_v14 = vsel %vm38_vm3, 0.0, %v12_v12  ;;  %vm27_vm4 = vcmp.ge.s32.totalorder %v19_v8, %v25_v13 }
  0x89   :  { %v35_v15 = vpop.permute.xlu1 %34  ;;  %v44_v16 = vsel %vm43_vm2, %v40_v14, 0.0 }
  0x8a   :  { %vm37_vm5 = vcmp.lt.s32.totalorder %v19_v8, %v35_v15  ;;  %46 = vadd.xlane.f32.xlu0 %v44_v16 }
  0x8b   :  { %vm39_vm6 = vmand %vm27_vm4, %vm37_vm5 }
  0x8c   :  { %v41_v18 = vsel %vm39_vm6, 0.0, %v13_v17 }
  0x8d   :  { %v45_v19 = vsel %vm43_vm2, %v41_v18, 0.0 }
  0x8e   :  { %48 = vadd.xlane.f32.xlu1 %v45_v19 }
  0x9f   :  { %58 = vperm.xlu1 %93, %v53_v20  }
  0xa0   :  { %55 = vperm.xlu0 %92, %v52_v21  }
 0x117   :  { %v47_v22 = vpop.xlane.xlu0 %46 }
 0x118   :  { %vm50_vm10 = vcmp.ge.f32.partialorder %v47_v22, 2.0 }
 0x11b   :  { %v49_v23 = vpop.xlane.xlu1 %48 }
 0x11c   :  { %vm51_vm7 = vcmp.ge.f32.partialorder %v49_v23, 2.0 }
 0x11f   :  { %v59_v24 = vpop.permute.xlu1 %58  ;;  %v56_v25 = vpop.permute.xlu0 %55 }
 0x120   :  { %vm61_vm8 = vcmp.eq.s32.totalorder %v19_v8, %v59_v24  ;;  %vm60_vm9 = vcmp.eq.s32.totalorder %v19_v8, %v56_v25 }
 0x121   :  { %vm67_vm11 = vmand %vm51_vm7, %vm61_vm8 }
 0x122   :  { %v69_v26 = vsel %vm67_vm11, 999.0, %v41_v18  ;;  %vm66_vm12 = vmand %vm50_vm10, %vm60_vm9 }
 0x123   :  { %71 = vst [vmem:[#allocation2 + $0x8] sm:$0xff] %v69_v26  ;;  %v68_v27 = vsel %vm66_vm12, 999.0, %v40_v14 }
 0x124   :  { %70 = vst [vmem:[#allocation2] sm:$0xff] %v68_v27 }
 0x125   :  { %105 = shalt.err (!%p102_p4)
}
 0x126   :  { %s106_s20 = scalar_lea.hbm %s163_s2, 256 }
 0x127   :  { %p107_p5 = scmp.ne.s32.totalorder %s163_s2, %s106_s20  ;;  %p110_p6 = scmp.lt.u32.totalorder %s106_s20, %s163_s2 }
 0x129   :  { %p112_p7 = pnand %p110_p6, %p107_p5 }
 0x12b   :  { %115 = shalt.err (!%p112_p7)
}
 0x12c   :  { %s120_s25 = smov 128   ;;  %s121_s26 = smov 8  }
 0x12d   :  { %83 = dma.vmem_to_hbm [thread:$0]  %s78_s17, 256, %s163_s2, [#allocation3], %s120_s25, %s120_s25, %s121_s26  }
 0x12e   :  { %116 = dma.done.wait [#allocation3], 256  }
 0x12f   :  { %117 = vsyncadd [#allocation3], 4294967040 }
 0x130   :  { %87 = vsyncpa [#allocation3], 1 }

</bundles_post_ra>
